<compile_context>
chip_gen: v6e
topology: v6e:2x2x1
jax: 0.10.0
libtpu: 0.0.40
codegen_flags: <defaults>
</compile_context>

<pallas_src>
import math

import jax
import jax.numpy as jnp
from jax.experimental import pallas as pl
from jax.experimental.pallas import tpu as pltpu

EPS = 1.1920929e-07     # torch.finfo(torch.float32).eps (F.rms_norm default eps)
INIT_SCALE = 0.01       # Hyperparameters.init_scale

_VMEM_LIMIT_CACHE = None


# ----------------------------- small helpers ------------------------------

def _vmem_limit():
    """~3/4 of physical VMEM (96 MiB on v5e/v6e, 48 MiB on v7x)."""
    global _VMEM_LIMIT_CACHE
    if _VMEM_LIMIT_CACHE is None:
        cap = 64 * 1024 * 1024
        try:
            info = pltpu.get_tpu_info()
            cap = int(getattr(info, "vmem_capacity_bytes", cap))
        except Exception:
            pass
        _VMEM_LIMIT_CACHE = int(min(cap * 3 // 4, 112 * 1024 * 1024))
    return _VMEM_LIMIT_CACHE


def _rms_norm(x):
    # x * rsqrt(mean(x^2, -1) + eps)  == F.rms_norm(x, (x.size(-1),))
    return x * jax.lax.rsqrt(jnp.mean(x * x, axis=-1, keepdims=True) + EPS)


def _pick_tile(n, max_tile):
    for cand in (max_tile, 2048, 1024, 512, 256, 128, 64, 32, 16, 8):
        if cand <= max_tile and n % cand == 0:
            return cand
    return n


def _heads_per_step(n_head, head_dim):
    k = max(1, min(n_head, 128 // max(head_dim, 1))) if head_dim < 128 else 1
    while n_head % k:
        k -= 1
    return k


# ------------------------------ Pallas kernels -----------------------------

def rmsnorm_kernel(x_ref, o_ref):
    o_ref[...] = _rms_norm(x_ref[...]).astype(o_ref.dtype)


def attn_kernel(xn_ref, wqkv_ref, cos_ref, sin_ref, rot_ref, y_ref):
    """K heads of causal attention for one batch element.

    xn_ref:   (1, T, C)        bf16, already rms_norm'd.
    wqkv_ref: (1, C, K*3*hd)   bf16 fused [Q|K|V] slices for K heads.
    cos/sin:  (T, hd)          bf16 full-width tables (sin second half negated).
    rot_ref:  (hd, hd)         bf16 rotate-half permutation (0/1 -> exact).
    y_ref:    (1, T, K*hd)     bf16 block of the head-major (B, T, C) output.
    """
    xn = xn_ref[0]                                   # (T, C) bf16
    hd = rot_ref.shape[0]
    n_heads = wqkv_ref.shape[-1] // (3 * hd)
    T = xn.shape[0]
    scale = 1.0 / math.sqrt(hd)

    # One wide MXU matmul for all K heads' Q, K, V (bf16 in, f32 accumulate).
    qkv = jnp.dot(xn, wqkv_ref[0], preferred_element_type=jnp.float32)

    cos = cos_ref[...]
    sin = sin_ref[...]
    rot = rot_ref[...]

    # Causal mask from broadcast iotas (no (T, T) int32 temporaries).
    row = jax.lax.broadcasted_iota(jnp.int32, (T, 1), 0)
    col = jax.lax.broadcasted_iota(jnp.int32, (1, T), 1)
    causal = col <= row                              # (T, T) bool via broadcast

    def rope(t):  # full-vreg elementwise + tiny bf16 permutation matmul
        rotated = jnp.dot(t.astype(jnp.bfloat16), rot,
                          preferred_element_type=jnp.float32)
        return t * cos + rotated * sin

    for kk in range(n_heads):                        # static unroll, <= 16
        base = kk * 3 * hd
        q = qkv[:, base:base + hd]                   # (T, hd) f32
        kmat = qkv[:, base + hd:base + 2 * hd]
        v = qkv[:, base + 2 * hd:base + 3 * hd]

        qh = (rope(_rms_norm(q)) * scale).astype(jnp.bfloat16)
        kh = rope(_rms_norm(kmat)).astype(jnp.bfloat16)

        # scores = qh @ kh.T (contract on head_dim), f32 accumulate
        s = jax.lax.dot_general(qh, kh, (((1,), (1,)), ((), ())),
                                preferred_element_type=jnp.float32)   # (T, T)
        s = jnp.where(causal, s, -jnp.inf)
        s = s - jnp.max(s, axis=-1, keepdims=True)
        p = jnp.exp(s)
        p = p * pl.reciprocal(jnp.sum(p, axis=-1, keepdims=True), approx=True)

        y = jnp.dot(p.astype(jnp.bfloat16), v.astype(jnp.bfloat16),
                    preferred_element_type=jnp.float32)               # (T, hd)
        y_ref[0, :, kk * hd:(kk + 1) * hd] = y.astype(y_ref.dtype)
    # TODO(synk): for very long T (>= ~1536 on v7x's 64 MiB VMEM) switch to
    # flash-style query/key tiling with online softmax instead of the full
    # (T, T) score matrix.


def proj_mlp_kernel(y_ref, x_ref, wo_ref, wfc_ref, wpr_ref, o_ref, xn_ref):
    """Row tile i, hidden tile k:
       k==0: x1 = x + y @ wo ; xn = rms_norm(x1) ; o = x1
       all k: o += c_proj_k(relu(c_fc_k(xn))^2)
    """
    @pl.when(pl.program_id(1) == 0)
    def _():
        x1 = x_ref[...] + jnp.dot(y_ref[...], wo_ref[...],
                                  preferred_element_type=jnp.float32)
        xn_ref[...] = _rms_norm(x1).astype(jnp.bfloat16)
        o_ref[...] = x1

    h = jnp.dot(xn_ref[...], wfc_ref[...], preferred_element_type=jnp.float32)
    h = jnp.square(jnp.maximum(h, 0.0)).astype(jnp.bfloat16)          # relu^2
    o_ref[...] = o_ref[...] + jnp.dot(h, wpr_ref[...],
                                      preferred_element_type=jnp.float32)


def lm_head_kernel(x_ref, w_ref, o_ref):
    """Final rms_norm (last token only) fused with a vocab-tiled matmul."""
    xn = _rms_norm(x_ref[...]).astype(jnp.bfloat16)
    o_ref[...] = jnp.dot(xn, w_ref[...], preferred_element_type=jnp.float32)


# ------------------------------ Pallas wrappers ----------------------------

def rmsnorm_rows(x2d, out_dtype=jnp.float32):
    R, C = x2d.shape
    rt = _pick_tile(R, 1024)
    return pl.pallas_call(
        rmsnorm_kernel,
        out_shape=jax.ShapeDtypeStruct((R, C), out_dtype),
        grid=(R // rt,),
        in_specs=[pl.BlockSpec((rt, C), lambda i: (i, 0))],
        out_specs=pl.BlockSpec((rt, C), lambda i: (i, 0)),
        compiler_params=pltpu.CompilerParams(
            dimension_semantics=("parallel",),
            vmem_limit_bytes=_vmem_limit()),
    )(x2d)


def attn_pallas(xn, wqkv, cos_full, sin_signed, rot):
    """xn: (B, T, C) bf16 normalized; wqkv: (G, C, K*3*hd) bf16.
    Returns y: (B, T, C) bf16, head-major columns (no transpose needed)."""
    B, T, C = xn.shape
    G, _, kw = wqkv.shape
    hd = rot.shape[0]
    k_heads = kw // (3 * hd)
    lane_w = k_heads * hd

    return pl.pallas_call(
        attn_kernel,
        out_shape=jax.ShapeDtypeStruct((B, T, C), jnp.bfloat16),
        grid=(B * G,),        # single flattened parallel axis (megacore-balanced)
        in_specs=[
            pl.BlockSpec((1, T, C), lambda i: (i // G, 0, 0)),
            pl.BlockSpec((1, C, kw), lambda i: (i % G, 0, 0)),
            pl.BlockSpec((T, hd), lambda i: (0, 0)),
            pl.BlockSpec((T, hd), lambda i: (0, 0)),
            pl.BlockSpec((hd, hd), lambda i: (0, 0)),
        ],
        out_specs=pl.BlockSpec((1, T, lane_w), lambda i: (i // G, 0, i % G)),
        compiler_params=pltpu.CompilerParams(
            dimension_semantics=("parallel",),
            vmem_limit_bytes=_vmem_limit()),
    )(xn, wqkv, cos_full, sin_signed, rot)


def proj_mlp_pallas(y2d, x2d, wo, wfc, wpr):
    R, C = x2d.shape
    hidden = wfc.shape[1]
    rt = _pick_tile(R, 1024)
    ht = _pick_tile(hidden, 2048)
    return pl.pallas_call(
        proj_mlp_kernel,
        out_shape=jax.ShapeDtypeStruct((R, C), jnp.float32),
        grid=(R // rt, hidden // ht),
        in_specs=[
            pl.BlockSpec((rt, C), lambda i, k: (i, 0)),    # y (bf16)
            pl.BlockSpec((rt, C), lambda i, k: (i, 0)),    # x (f32 residual)
            pl.BlockSpec((C, C), lambda i, k: (0, 0)),     # wo
            pl.BlockSpec((C, ht), lambda i, k: (0, k)),    # wfc hidden tile
            pl.BlockSpec((ht, C), lambda i, k: (k, 0)),    # wpr hidden tile
        ],
        out_specs=pl.BlockSpec((rt, C), lambda i, k: (i, 0)),
        scratch_shapes=[pltpu.VMEM((rt, C), jnp.bfloat16)],
        compiler_params=pltpu.CompilerParams(
            dimension_semantics=("parallel", "arbitrary"),
            vmem_limit_bytes=_vmem_limit()),
    )(y2d, x2d, wo, wfc, wpr)


def lm_head_pallas(x_last, w):
    B, C = x_last.shape
    V = w.shape[1]
    vt = _pick_tile(V, 2048)
    return pl.pallas_call(
        lm_head_kernel,
        out_shape=jax.ShapeDtypeStruct((B, V), jnp.float32),
        grid=(V // vt,),
        in_specs=[
            pl.BlockSpec((B, C), lambda j: (0, 0)),
            pl.BlockSpec((C, vt), lambda j: (0, j)),
        ],
        out_specs=pl.BlockSpec((B, vt), lambda j: (0, j)),
        compiler_params=pltpu.CompilerParams(
            dimension_semantics=("parallel",),
            vmem_limit_bytes=_vmem_limit()),
    )(x_last, w)


# ------------------------------- GPT forward -------------------------------

def make_rotary_tables(T, head_dim):
    d = head_dim // 2
    inv_freq = 1.0 / (10000.0 ** (jnp.arange(0, head_dim, 2, dtype=jnp.float32)
                                   / head_dim))
    t = jnp.arange(T, dtype=jnp.float32)
    freqs = jnp.outer(t, inv_freq)                          # (T, d)
    cos = jnp.cos(freqs)
    sin = jnp.sin(freqs)
    # torch caches cos/sin in bfloat16; store bf16 (halves table DMA).
    cos_full = jnp.concatenate([cos, cos], axis=-1).astype(jnp.bfloat16)
    sin_signed = jnp.concatenate([sin, -sin], axis=-1).astype(jnp.bfloat16)
    # rotate-half permutation: (t @ rot)[j] = t[(j - d) % hd]  -> [x2, x1]
    i = jnp.arange(head_dim)
    rot = (i[None, :] == ((i[:, None] + d) % head_dim)).astype(jnp.bfloat16)
    return cos_full, sin_signed, rot


def gpt_forward(idx, params, *, n_head):
    """Equivalent of GPT.forward(idx, targets=None, return_logits=True).

    Returns logits of shape (B, 1, vocab_size), float32 (loss is None).
    """
    wte = params["wte"]                                     # (V, C) f32
    B, T = idx.shape
    C = wte.shape[1]
    head_dim = C // n_head

    cos_full, sin_signed, rot = make_rotary_tables(T, head_dim)

    x = wte[idx].reshape(B * T, C)                          # embedding gather (glue)
    x = rmsnorm_rows(x)                                     # (B*T, C) f32 residual

    for (wqkv, wo, wfc, wpr) in params["layers"]:
        # block rms_norm computed once per layer (bf16) -> attention input
        xn = rmsnorm_rows(x, out_dtype=jnp.bfloat16).reshape(B, T, C)
        y = attn_pallas(xn, wqkv, cos_full, sin_signed, rot)   # (B, T, C) bf16
        x = proj_mlp_pallas(y.reshape(B * T, C), x, wo, wfc, wpr)

    # forward consumes only the last token; final rms_norm is row-wise, so it
    # is applied to just x[:, -1, :] inside the lm_head kernel.
    x_last = x.reshape(B, T, C)[:, -1, :]                   # (B, C)
    logits = lm_head_pallas(x_last, params["lm_head"])      # (B, V) f32
    return logits[:, None, :]                               # (B, 1, V)


# ------------------------------ parameter init ------------------------------

def init_params(key, *, vocab_size, n_embd, n_head, n_layer):
    C = n_embd
    hd = C // n_head
    k_heads = _heads_per_step(n_head, hd)
    groups = n_head // k_heads

    def linear(key, fan_in, fan_out, scale=1.0):
        bound = 1.0 / math.sqrt(fan_in)
        w = jax.random.uniform(key, (fan_out, fan_in), jnp.float32,
                               -bound, bound)
        return (w * scale).T                                # stored (in, out)

    keys = jax.random.split(key, 2 + 6 * n_layer)
    wte = jax.random.normal(keys[0], (vocab_size, C), jnp.float32)
    lm_head = linear(keys[1], C, vocab_size,
                     scale=INIT_SCALE).astype(jnp.bfloat16)

    layers = []
    for l in range(n_layer):
        k = keys[2 + 6 * l: 2 + 6 * (l + 1)]
        wq = linear(k[0], C, C).reshape(C, n_head, hd)
        wk = linear(k[1], C, C).reshape(C, n_head, hd)
        wv = linear(k[2], C, C).reshape(C, n_head, hd)
        # fused grouped QKV: (C, H, 3, hd) -> (G, C, K*3*hd); within a group,
        # local head kk occupies columns [kk*3*hd : (kk+1)*3*hd] = [Q|K|V].
        qkv = jnp.stack([wq, wk, wv], axis=2)               # (C, H, 3, hd)
        qkv = qkv.reshape(C, groups, k_heads, 3, hd)
        wqkv = jnp.transpose(qkv, (1, 0, 2, 3, 4)).reshape(
            groups, C, k_heads * 3 * hd).astype(jnp.bfloat16)

        wo = linear(k[3], C, C, scale=INIT_SCALE).astype(jnp.bfloat16)
        wfc = linear(k[4], C, 4 * C).astype(jnp.bfloat16)
        wpr = linear(k[5], 4 * C, C, scale=INIT_SCALE).astype(jnp.bfloat16)
        layers.append((wqkv, wo, wfc, wpr))

    return {"wte": wte, "lm_head": lm_head, "layers": layers}


# ----------------------------------- main -----------------------------------

if __name__ == "__main__":
    # small, forward-consistent config
    vocab_size, n_embd, n_head, n_layer = 256, 32, 4, 2
    B, T = 2, 8

    key = jax.random.PRNGKey(0)
    k_params, k_idx = jax.random.split(key)
    params = init_params(k_params, vocab_size=vocab_size, n_embd=n_embd,
                         n_head=n_head, n_layer=n_layer)
    idx = jax.random.randint(k_idx, (B, T), 0, vocab_size, dtype=jnp.int32)

    logits = gpt_forward(idx, params, n_head=n_head)
    logits = jax.block_until_ready(logits)

    assert logits.shape == (B, 1, vocab_size)
    assert logits.dtype == jnp.float32
    assert bool(jnp.all(jnp.isfinite(logits)))
    print("KERNEL_OK")
</pallas_src>

<mosaic_0001>
module attributes {stable_mosaic.version = 11 : i64} {
  func.func @rmsnorm_kernel(%arg0: i32, %arg1: memref<16x32xf32, #tpu.memory_space<vmem>>, %arg2: memref<16x32xf32, #tpu.memory_space<vmem>>) attributes {dimension_semantics = [#tpu.dimension_semantics<parallel>], iteration_bounds = array<i64: 1>, scalar_prefetch = 0 : i64, scratch_operands = 0 : i64, tpu.core_type = #tpu.core_type<tc>, window_params = [{transform_indices = @transform_0, window_bounds = array<i64: 16, 32>}, {transform_indices = @transform_1, window_bounds = array<i64: 16, 32>}]} {
    %c0 = arith.constant 0 : index
    %c0_0 = arith.constant 0 : index
    %0 = vector.load %arg1[%c0, %c0_0] : memref<16x32xf32, #tpu.memory_space<vmem>>, vector<16x32xf32>
    %1 = arith.mulf %0, %0 : vector<16x32xf32>
    %cst = arith.constant dense<0.000000e+00> : vector<16xf32>
    %2 = vector.multi_reduction <add>, %1, %cst [1] : vector<16x32xf32> to vector<16xf32>
    %3 = vector.shape_cast %2 : vector<16xf32> to vector<16x1xf32>
    %cst_1 = arith.constant 3.200000e+01 : f32
    %4 = vector.broadcast %cst_1 : f32 to vector<16x1xf32>
    %5 = arith.divf %3, %4 : vector<16x1xf32>
    %cst_2 = arith.constant 1.1920929E-7 : f32
    %6 = vector.broadcast %cst_2 : f32 to vector<16x1xf32>
    %7 = arith.addf %5, %6 : vector<16x1xf32>
    %8 = math.rsqrt %7 : vector<16x1xf32>
    %9 = vector.broadcast %8 : vector<16x1xf32> to vector<16x32xf32>
    %10 = arith.mulf %0, %9 : vector<16x32xf32>
    %c0_3 = arith.constant 0 : index
    %c0_4 = arith.constant 0 : index
    %11 = vector.load %arg2[%c0_3, %c0_4] : memref<16x32xf32, #tpu.memory_space<vmem>>, vector<16x32xf32>
    tpu.vector_store %arg2[%c0_3, %c0_4], %10 {strides = array<i32>} : memref<16x32xf32, #tpu.memory_space<vmem>>, vector<16x32xf32>,
    return
  }
  func.func @transform_0(%arg0: i32) -> (i32, i32) {
    %c0_i32 = arith.constant 0 : i32
    %c0_i32_0 = arith.constant 0 : i32
    return %arg0, %c0_i32 : i32, i32
  }
  func.func @transform_1(%arg0: i32) -> (i32, i32) {
    %c0_i32 = arith.constant 0 : i32
    %c0_i32_0 = arith.constant 0 : i32
    return %arg0, %c0_i32 : i32, i32
  }
}

</mosaic_0001>

<bundles_post_ra>
// kernel: tpu_custom_call.1
= control target key start
LH: loop header
LB: loop body
LE: loop exit
PB: predicated region body
PF: predicated region fallthrough
CT: control target
= control target key end

     0   :  { %6 = vsyncpa [#allocation3], 0  ;;  %s144_s0 = inlined_call_operand.hbm [shape: f32[16,32], index: 0, kind: input, shape index: {}]   ;;  %s145_s1 = inlined_call_operand.hbm [shape: f32[16,32], index: 1, kind: output, shape index: {}]  }
   0x1   :  { %7 = vsyncpa [#allocation4], 0  ;;  %s114_s6 = smov [#allocation2]  }
   0x2   :  { %s13_s7 = sshll.u32 %s114_s6, 4  ;;  %s14_s7 = int_to_ptr.vmem [resolvable:$true] %s13_s7 }
   0x3   :  { %s78_s8 = scalar_lea.vmem %s14_s7, 256  ;;  %p83_p1 = scmp.lt.s32.totalorder %s14_s7, %s14_s7 }
   0x4   :  { %p79_p0 = scmp.ne.s32.totalorder %s14_s7, %s78_s8  ;;  %p84_p2 = scmp.lt.s32.totalorder %s78_s8, %s78_s8 }
   0x6   :  { %p85_p3 = por %p84_p2, %p83_p1 }
   0x8   :  { %p86_p4 = pnand %p85_p3, %p79_p0 }
   0xa   :  { %89 = shalt.err (!%p86_p4)
}
   0xb   :  { %s115_s9 = smov 128   ;;  %s116_s10 = smov 8  }
   0xc   :  { %19 = dma.hbm_to_vmem [thread:$0]  %s144_s0, 256, %s14_s7, [#allocation3], %s115_s9, %s115_s9, %s116_s10  }
   0xd   :  { %110 = dma.done.wait [#allocation3], 256  }
   0xe   :  { %111 = vsyncadd [#allocation3], 4294967040  ;;  %v23_v0 = vld [vmem:[#allocation2] sm:$0xff]  ;;  %vm27_vm0 = vcmask 261120   ;;  %v24_v1 = vld [vmem:[#allocation2 + $0x8] sm:$0xff]  ;;  %s117_s0 = smov [#allocation5]  }
   0xf   :  { %v25_v2 = vmul.f32 %v23_v0, %v23_v0  ;;  %v26_v3 = vmul.f32 %v24_v1, %v24_v1  ;;  %s50_s13 = sshll.u32 %s117_s0, 4  ;;  %s51_s13 = int_to_ptr.vmem [resolvable:$true] %s50_s13 }
  0x10   :  { %s90_s14 = scalar_lea.vmem %s51_s13, 256  ;;  %p95_p6 = scmp.lt.s32.totalorder %s51_s13, %s51_s13 }
  0x11   :  { %v28_v4 = vsel %vm27_vm0, %v25_v2, 0.0  ;;  %v31_v5 = vsel %vm27_vm0, %v26_v3, 0.0  ;;  %p91_p5 = scmp.ne.s32.totalorder %s51_s13, %s90_s14  ;;  %p96_p7 = scmp.lt.s32.totalorder %s90_s14, %s90_s14 }
  0x12   :  { %29 = vadd.xlane.f32.xlu0 %v28_v4 }
  0x13   :  { %p97_p8 = por %p96_p7, %p95_p6 }
  0x15   :  { %p98_p9 = pnand %p97_p8, %p91_p5 }
  0x16   :  { %32 = vadd.xlane.f32.xlu0 %v31_v5 }
  0x9b   :  { %v30_v6 = vpop.xlane.xlu0 %29 }
  0x9c   :  { %v35_v7 = vmul.f32 0.03125, %v30_v6 }
  0x9e   :  { %v37_v8 = vadd.f32 1.1920929e-07, %v35_v7 }
  0x9f   :  { %v33_v9 = vpop.xlane.xlu0 %32 }
  0xa0   :  { %66 = vrsqrt.f32 %v37_v8  ;;  %v36_v10 = vmul.f32 0.03125, %v33_v9 }
  0xa2   :  { %v38_v11 = vadd.f32 1.1920929e-07, %v36_v10 }
  0xa4   :  { %68 = vrsqrt.f32 %v38_v11 }
  0xad   :  { %v67_v12 = vpop.eup %66 }
  0xae   :  { %v41_v13 = vmul.f32 %v67_v12, %v23_v0 }
  0xb0   :  { %43 = vst.msk [vmem:[#allocation5] sm:$0xff] %vm27_vm0, %v41_v13 }
  0xb1   :  { %v69_v14 = vpop.eup %68 }
  0xb2   :  { %v42_v15 = vmul.f32 %v69_v14, %v24_v1 }
  0xb4   :  { %44 = vst.msk [vmem:[#allocation5 + $0x8] sm:$0xff] %vm27_vm0, %v42_v15 }
  0xb5   :  { %101 = shalt.err (!%p98_p9)
}
  0xb6   :  { %56 = dma.vmem_to_hbm [thread:$0]  %s51_s13, 256, %s145_s1, [#allocation4], %s115_s9, %s115_s9, %s116_s10  }
  0xb7   :  { %112 = dma.done.wait [#allocation4], 256  }
  0xb8   :  { %113 = vsyncadd [#allocation4], 4294967040 }
  0xb9   :  { %60 = vsyncpa [#allocation3], 1 }
  0xba   :  { %61 = vsyncpa [#allocation4], 1 }

</bundles_post_ra>
